<compile_context>
chip_gen: v6e
topology: v6e:2x2x1
jax: 0.10.0
libtpu: 0.0.40
codegen_flags: <defaults>
</compile_context>

<pallas_src>
import math

import jax
import jax.numpy as jnp
from jax import lax
from jax.experimental import pallas as pl
from jax.experimental.pallas import tpu as pltpu

# Python float literals only (never close over jnp scalars inside a kernel).
_NEG = -1e30
_BIG = 1e30


# ----------------------------------------------------------------------------
# In-kernel helper: kNN selection fused with MXU max-gather of node messages
# ----------------------------------------------------------------------------
def _knn_gather_max(rows_ref, featT_ref, sq_ref, bcol_ref, brow_ref, b_ref,
                    n, tm, k):
    """max_{j in knn(i)} b[j, :] for every row i of this tile.

    rows_ref:  [tm, d]  node features of the tile rows
    featT_ref: [d, n]   all node features, pre-transposed in the glue
    sq_ref:    [1, n]   |x_j|^2 (glue)
    bcol_ref:  [tm, 1]  batch id of the tile rows
    brow_ref:  [1, n]   batch id of every node
    b_ref:     [n, c]   hoisted node-side message term x_j @ wn (glue)
    returns    [tm, c]  running max over the k gathered b rows (f32)
    """
    # kNN key via the Gram identity: dist_ij = |x_i|^2 + |x_j|^2 - 2 x_i.x_j.
    # |x_i|^2 is constant per row -> dropped (ordering unchanged).  Keys are
    # kept in f32; natural [M,K]x[K,N] MXU layout via the pre-transposed rhs.
    xx = jnp.dot(rows_ref[...], featT_ref[...],
                 preferred_element_type=jnp.float32)            # [tm, n]
    key = sq_ref[...] - 2.0 * xx                                # [tm, n]

    # same-graph mask computed on the fly from two small int32 vectors
    same = bcol_ref[...] == brow_ref[...]                       # [tm, n]
    key = jnp.where(same, key, _BIG)

    col = lax.broadcasted_iota(jnp.int32, (tm, n), 1)
    b_all = b_ref[...]                                          # [n, c]
    c = b_all.shape[1]

    def body(_, carry):
        key, m = carry
        # one row-min for the value, one for the tie-break (lowest column idx)
        rmin = jnp.min(key, axis=1, keepdims=True)              # [tm, 1]
        cand = key <= rmin
        sel_idx = jnp.min(jnp.where(cand, col, n), axis=1, keepdims=True)
        sel = col == sel_idx                                    # one-hot [tm,n]
        # gather b[sel_idx, :] with a single MXU matmul (one-hot @ [n, c])
        picked = jnp.dot(sel.astype(jnp.float32), b_all,
                         preferred_element_type=jnp.float32)    # [tm, c]
        m = jnp.maximum(m, picked)
        key = jnp.where(sel, _BIG, key)                         # drop from pool
        return key, m

    m0 = jnp.full((tm, c), _NEG, dtype=jnp.float32)
    _, m = lax.fori_loop(0, k, body, (key, m0), unroll=True)    # k is small
    return m


def _make_conv1_kernel(n, tm, k):
    def kernel(rows_ref, featT_ref, sq_ref, bcol_ref, brow_ref,
               a_ref, b_ref, ps_ref, pb_ref, out_ref, sqo_ref):
        m = _knn_gather_max(rows_ref, featT_ref, sq_ref, bcol_ref, brow_ref,
                            b_ref, n, tm, k)
        # max_j leaky(a + b_j) == leaky(a + max_j b_j)  (monotone LeakyReLU)
        msg = a_ref[...] + m
        msg = jnp.where(msg > 0, msg, 0.2 * msg)
        h = jnp.maximum(msg * ps_ref[...] + pb_ref[...], 0.0)   # bn1 + ReLU
        out_ref[...] = h
        sqo_ref[...] = jnp.sum(h * h, axis=1, keepdims=True)    # |h1|^2 (conv2)
    return kernel


def _make_conv2_kernel(n, tm, k):
    def kernel(rows_ref, featT_ref, sq_ref, bcol_ref, brow_ref,
               a_ref, b_ref, ps_ref, pb_ref, id_ref, out_ref):
        m = _knn_gather_max(rows_ref, featT_ref, sq_ref, bcol_ref, brow_ref,
                            b_ref, n, tm, k)
        msg = a_ref[...] + m
        msg = jnp.where(msg > 0, msg, 0.2 * msg)
        # bn2 + residual add + final ReLU fused into the epilogue
        out_ref[...] = jnp.maximum(
            msg * ps_ref[...] + pb_ref[...] + id_ref[...], 0.0)
    return kernel


def _proj_kernel(idfn_ref, wp_ref, bp_ref, out_ref):
    # 1x1 Conv1d (+ folded BN) over the PyTorch-viewed [F, N] identity,
    # gridded over column tiles of N.
    out_ref[...] = (jnp.dot(wp_ref[...], idfn_ref[...],
                            preferred_element_type=jnp.float32) + bp_ref[...])


# ----------------------------------------------------------------------------
# Tiling / padding / VMEM helpers
# ----------------------------------------------------------------------------
def _pad_rows(n):
    """Row padding and row-tile size (multiples of 8; 128-row tiles when big)."""
    if n >= 128:
        n_pad = ((n + 127) // 128) * 128
        return n_pad, 128
    n_pad = ((n + 7) // 8) * 8
    return n_pad, n_pad


def _vmem_limit_bytes(n_pad, d, c, tm):
    """Scoped-VMEM request derived from actual buffer sizes (f32), clamped to
    [32 MiB, 64 MiB] so it is valid on v5e/v6e (128 MiB) and v7x (64 MiB)."""
    fb = 4
    resident = fb * (d * n_pad + n_pad * c + 3 * n_pad)    # featT, b_all, sq/brow
    tiles = fb * (tm * d + 3 * tm * c + 2 * tm)            # rows, a, id, out, ...
    temps = fb * (6 * tm * n_pad + 4 * tm * c)             # key/xx/same/sel/col
    est = 2 * (resident + tiles) + temps + (8 << 20)
    return int(max(32 << 20, min(64 << 20, est)))


# ----------------------------------------------------------------------------
# Wrapper (parameter folding, hoisted matmuls, row-major views, pallas_call)
# ----------------------------------------------------------------------------
def residual_dec_block(x, batch, params, k):
    n, f = x.shape
    c = params["w1"].shape[0]
    x = x.astype(jnp.float32)
    hp = jax.lax.Precision.HIGHEST

    n_pad, tm = _pad_rows(n)
    grid = (n_pad // tm,)
    pad_r = n_pad - n

    x_p = jnp.pad(x, ((0, pad_r), (0, 0)))
    batch_p = jnp.pad(batch.astype(jnp.int32), (0, pad_r), constant_values=-1)
    bcol = batch_p.reshape(n_pad, 1)
    brow = batch_p.reshape(1, n_pad)
    row = lambda v: v.reshape(1, -1).astype(jnp.float32)

    def fold_edge(w, scale, shift, din):
        ws = ((w[:, :din] - w[:, din:]) * scale[:, None]).T.astype(jnp.float32)
        wn = (w[:, din:] * scale[:, None]).T.astype(jnp.float32)
        return ws, wn, shift.reshape(1, -1).astype(jnp.float32)

    w1s, w1n, e1sh = fold_edge(params["w1"], params["s1e"], params["b1e"], f)
    w2s, w2n, e2sh = fold_edge(params["w2"], params["s2e"], params["b2e"], c)

    full = lambda shape: pl.BlockSpec(shape, lambda i: (0, 0))
    tiled = lambda shape: pl.BlockSpec(shape, lambda i: (i, 0))

    # NOTE: on v7x, pltpu.CORE_PARALLEL on the row axis would shard the grid
    # across the 2 TensorCores; plain "parallel" is kept here for portability.
    def cparams(d):
        return pltpu.CompilerParams(
            dimension_semantics=("parallel",),
            vmem_limit_bytes=_vmem_limit_bytes(n_pad, d, c, tm))

    # ---- conv1: node-side matmuls hoisted out of the grid (computed once) ----
    featT1 = x_p.T                                           # [f, n_pad]
    sq_x = row(jnp.sum(x_p * x_p, axis=1))                   # [1, n_pad]
    a1 = jnp.dot(x_p, w1s, precision=hp) + e1sh              # [n_pad, c]
    b1 = jnp.dot(x_p, w1n, precision=hp)                     # [n_pad, c]

    h1, h1sq = pl.pallas_call(
        _make_conv1_kernel(n_pad, tm, k),
        out_shape=(jax.ShapeDtypeStruct((n_pad, c), jnp.float32),
                   jax.ShapeDtypeStruct((n_pad, 1), jnp.float32)),
        grid=grid,
        in_specs=[tiled((tm, f)), full((f, n_pad)), full((1, n_pad)),
                  tiled((tm, 1)), full((1, n_pad)),
                  tiled((tm, c)), full((n_pad, c)),
                  full((1, c)), full((1, c))],
        out_specs=(tiled((tm, c)), tiled((tm, 1))),
        compiler_params=cparams(f),
    )(x_p, featT1, sq_x, bcol, brow, a1, b1,
      row(params["s1"]), row(params["b1"]))

    # ---- shortcut (projection path reproduces PyTorch's raw .view) ----
    if params["wp"] is not None:
        id_fn = x.reshape(f, n)                              # .view(1,F,N)
        n_pp = ((n + 127) // 128) * 128
        id_fn_p = jnp.pad(id_fn, ((0, 0), (0, n_pp - n)))
        tn = 512 if n_pp % 512 == 0 else (256 if n_pp % 256 == 0 else 128)
        wp_f = (params["sp"][:, None] * params["wp"]).astype(jnp.float32)
        bp_f = (params["sp"] * params["bp"]
                + params["shp"]).reshape(-1, 1).astype(jnp.float32)
        proj_cn = pl.pallas_call(
            _proj_kernel,
            out_shape=jax.ShapeDtypeStruct((c, n_pp), jnp.float32),
            grid=(n_pp // tn,),
            in_specs=[pl.BlockSpec((f, tn), lambda j: (0, j)),
                      pl.BlockSpec((c, f), lambda j: (0, 0)),
                      pl.BlockSpec((c, 1), lambda j: (0, 0))],
            out_specs=pl.BlockSpec((c, tn), lambda j: (0, j)),
            compiler_params=pltpu.CompilerParams(
                dimension_semantics=("parallel",)),
        )(id_fn_p, wp_f, bp_f)
        identity = proj_cn[:, :n].reshape(n, c)              # .view(N, -1)
    else:
        identity = x
    identity_p = jnp.pad(identity, ((0, pad_r), (0, 0)))

    # ---- conv2: hoisted matmuls on the new features; residual fused ----
    featT2 = h1.T                                            # [c, n_pad]
    sq_h = h1sq.reshape(1, n_pad)                            # from conv1 kernel
    a2 = jnp.dot(h1, w2s, precision=hp) + e2sh               # [n_pad, c]
    b2 = jnp.dot(h1, w2n, precision=hp)                      # [n_pad, c]

    out = pl.pallas_call(
        _make_conv2_kernel(n_pad, tm, k),
        out_shape=jax.ShapeDtypeStruct((n_pad, c), jnp.float32),
        grid=grid,
        in_specs=[tiled((tm, c)), full((c, n_pad)), full((1, n_pad)),
                  tiled((tm, 1)), full((1, n_pad)),
                  tiled((tm, c)), full((n_pad, c)),
                  full((1, c)), full((1, c)), tiled((tm, c))],
        out_specs=tiled((tm, c)),
        compiler_params=cparams(c),
    )(h1, featT2, sq_h, bcol, brow, a2, b2,
      row(params["s2"]), row(params["b2"]), identity_p)
    return out[:n]


# ----------------------------------------------------------------------------
# Deterministic parameter init (mirrors module __init__ shapes)
# ----------------------------------------------------------------------------
def init_params(key, nfeat, nfeato):
    ks = jax.random.split(key, 9)

    def lin(k_, fan_in, shape):
        bound = 1.0 / math.sqrt(fan_in)
        return jax.random.uniform(k_, shape, jnp.float32, -bound, bound)

    def bn(k_, ch):
        k1, k2, k3, k4 = jax.random.split(k_, 4)
        gamma = 1.0 + 0.1 * jax.random.normal(k1, (ch,), jnp.float32)
        beta = 0.1 * jax.random.normal(k2, (ch,), jnp.float32)
        mean = 0.05 * jax.random.normal(k3, (ch,), jnp.float32)
        var = 1.0 + 0.1 * jax.random.uniform(k4, (ch,), jnp.float32)
        scale = gamma / jnp.sqrt(var + 1e-5)
        shift = beta - mean * scale
        return scale, shift

    w1 = lin(ks[0], 2 * nfeat, (nfeato, 2 * nfeat))        # Linear(2*nfeat, nfeato)
    s1e, b1e = bn(ks[1], nfeato)                           # BN inside conv1's nn
    s1, b1 = bn(ks[2], nfeato)                             # bn1
    w2 = lin(ks[3], 2 * nfeato, (nfeato, 2 * nfeato))      # Linear(2*nfeato, nfeato)
    s2e, b2e = bn(ks[4], nfeato)                           # BN inside conv2's nn
    s2, b2 = bn(ks[5], nfeato)                             # bn2
    if nfeat != nfeato:
        wp = lin(ks[6], nfeat, (nfeato, nfeat))            # Conv1d(nfeat, nfeato, 1)
        bp = lin(ks[7], nfeat, (nfeato,))
        sp, shp = bn(ks[8], nfeato)                        # BN of shortcut
    else:
        wp = bp = sp = shp = None
    return dict(w1=w1, s1e=s1e, b1e=b1e, s1=s1, b1=b1,
                w2=w2, s2e=s2e, b2e=b2e, s2=s2, b2=b2,
                wp=wp, bp=bp, sp=sp, shp=shp)


# ----------------------------------------------------------------------------
# Pure-JAX reference (same semantics) used only for a correctness check
# ----------------------------------------------------------------------------
def _reference(x, batch, p, k):
    n = x.shape[0]
    same = batch[:, None] == batch[None, :]
    hp = jax.lax.Precision.HIGHEST

    def edge_conv(feat, w, scale, shift):
        sq = jnp.sum(feat * feat, axis=1)
        key = sq[None, :] - 2.0 * jnp.dot(feat, feat.T, precision=hp)
        key = jnp.where(same, key, jnp.inf)
        _, idx = jax.lax.top_k(-key, k)                        # [n, k]
        xi = jnp.broadcast_to(feat[:, None, :], (n, k, feat.shape[1]))
        xj = feat[idx]
        msg = jnp.einsum("nkf,cf->nkc",
                         jnp.concatenate([xi, xj - xi], axis=-1), w,
                         precision=hp)
        msg = msg * scale + shift
        msg = jnp.where(msg > 0, msg, 0.2 * msg)
        return jnp.max(msg, axis=1)

    h = edge_conv(x, p["w1"], p["s1e"], p["b1e"])
    h = jnp.maximum(h * p["s1"] + p["b1"], 0.0)
    h = edge_conv(h, p["w2"], p["s2e"], p["b2e"])
    h = h * p["s2"] + p["b2"]
    if p["wp"] is not None:
        f = p["wp"].shape[1]
        id_fn = x.reshape(f, n)
        proj = (p["sp"][:, None]
                * (jnp.dot(p["wp"], id_fn, precision=hp) + p["bp"][:, None])
                + p["shp"][:, None])
        identity = proj.reshape(n, -1)
    else:
        identity = x
    return jnp.maximum(h + identity, 0.0)


if __name__ == "__main__":
    key = jax.random.PRNGKey(0)
    kx, kp = jax.random.split(key)

    N, NFEAT, NFEATO, K, NGRAPHS = 16, 4, 8, 4, 2
    x = jax.random.normal(kx, (N, NFEAT), jnp.float32)
    batch = jnp.repeat(jnp.arange(NGRAPHS, dtype=jnp.int32), N // NGRAPHS)
    params = init_params(kp, NFEAT, NFEATO)

    out = residual_dec_block(x, batch, params, K)
    out = jax.block_until_ready(out)

    assert out.shape == (N, NFEATO)
    assert bool(jnp.all(jnp.isfinite(out)))
    ref = _reference(x, batch, params, K)
    assert bool(jnp.allclose(out, ref, rtol=1e-3, atol=1e-3)), \
        float(jnp.max(jnp.abs(out - ref)))
    print("KERNEL_OK")
</pallas_src>

<mosaic_0001>
module attributes {stable_mosaic.version = 11 : i64} {
  func.func @kernel(%arg0: i32, %arg1: memref<16x4xf32, #tpu.memory_space<vmem>>, %arg2: memref<4x16xf32, #tpu.memory_space<vmem>>, %arg3: memref<1x16xf32, #tpu.memory_space<vmem>>, %arg4: memref<16x1xi32, #tpu.memory_space<vmem>>, %arg5: memref<1x16xi32, #tpu.memory_space<vmem>>, %arg6: memref<16x8xf32, #tpu.memory_space<vmem>>, %arg7: memref<16x8xf32, #tpu.memory_space<vmem>>, %arg8: memref<1x8xf32, #tpu.memory_space<vmem>>, %arg9: memref<1x8xf32, #tpu.memory_space<vmem>>, %arg10: memref<16x8xf32, #tpu.memory_space<vmem>>, %arg11: memref<16x1xf32, #tpu.memory_space<vmem>>) attributes {dimension_semantics = [#tpu.dimension_semantics<parallel>], iteration_bounds = array<i64: 1>, scalar_prefetch = 0 : i64, scratch_operands = 0 : i64, tpu.core_type = #tpu.core_type<tc>, window_params = [{transform_indices = @transform_0, window_bounds = array<i64: 16, 4>}, {pipeline_mode = #tpu.pipeline_mode<synchronous>, transform_indices = @transform_1, window_bounds = array<i64: 4, 16>}, {pipeline_mode = #tpu.pipeline_mode<synchronous>, transform_indices = @transform_2, window_bounds = array<i64: 1, 16>}, {transform_indices = @transform_3, window_bounds = array<i64: 16, 1>}, {pipeline_mode = #tpu.pipeline_mode<synchronous>, transform_indices = @transform_4, window_bounds = array<i64: 1, 16>}, {transform_indices = @transform_5, window_bounds = array<i64: 16, 8>}, {pipeline_mode = #tpu.pipeline_mode<synchronous>, transform_indices = @transform_6, window_bounds = array<i64: 16, 8>}, {pipeline_mode = #tpu.pipeline_mode<synchronous>, transform_indices = @transform_7, window_bounds = array<i64: 1, 8>}, {pipeline_mode = #tpu.pipeline_mode<synchronous>, transform_indices = @transform_8, window_bounds = array<i64: 1, 8>}, {transform_indices = @transform_9, window_bounds = array<i64: 16, 8>}, {transform_indices = @transform_10, window_bounds = array<i64: 16, 1>}]} {
    %c0 = arith.constant 0 : index
    %c0_0 = arith.constant 0 : index
    %0 = vector.load %arg1[%c0, %c0_0] : memref<16x4xf32, #tpu.memory_space<vmem>>, vector<16x4xf32>
    %c0_1 = arith.constant 0 : index
    %c0_2 = arith.constant 0 : index
    %1 = vector.load %arg2[%c0_1, %c0_2] : memref<4x16xf32, #tpu.memory_space<vmem>>, vector<4x16xf32>
    %cst = arith.constant dense<0.000000e+00> : vector<16x16xf32>
    %2 = tpu.matmul %0, %1, %cst {dimension_numbers = #tpu.dot_dimension_numbers<[1], [0], [0], [1], [0, 0, 1, 1], [], []>} : vector<16x4xf32>, vector<4x16xf32>, vector<16x16xf32> -> vector<16x16xf32>
    %c0_3 = arith.constant 0 : index
    %c0_4 = arith.constant 0 : index
    %3 = vector.load %arg3[%c0_3, %c0_4] : memref<1x16xf32, #tpu.memory_space<vmem>>, vector<1x16xf32>
    %cst_5 = arith.constant 2.000000e+00 : f32
    %4 = vector.broadcast %cst_5 : f32 to vector<16x16xf32>
    %5 = arith.mulf %4, %2 : vector<16x16xf32>
    %6 = vector.broadcast %3 : vector<1x16xf32> to vector<16x16xf32>
    %7 = arith.subf %6, %5 : vector<16x16xf32>
    %c0_6 = arith.constant 0 : index
    %c0_7 = arith.constant 0 : index
    %8 = vector.load %arg4[%c0_6, %c0_7] : memref<16x1xi32, #tpu.memory_space<vmem>>, vector<16x1xi32>
    %c0_8 = arith.constant 0 : index
    %c0_9 = arith.constant 0 : index
    %9 = vector.load %arg5[%c0_8, %c0_9] : memref<1x16xi32, #tpu.memory_space<vmem>>, vector<1x16xi32>
    %10 = vector.broadcast %8 : vector<16x1xi32> to vector<16x16xi32>
    %11 = vector.broadcast %9 : vector<1x16xi32> to vector<16x16xi32>
    %12 = arith.cmpi eq, %10, %11 : vector<16x16xi32>
    %cst_10 = arith.constant 1.000000e+30 : f32
    %13 = vector.broadcast %cst_10 : f32 to vector<16x16xf32>
    %14 = arith.select %12, %7, %13 : vector<16x16xi1>, vector<16x16xf32>
    %15 = tpu.iota {dimensions = array<i32: 1>} : vector<16x16xi32>
    %c0_11 = arith.constant 0 : index
    %c0_12 = arith.constant 0 : index
    %16 = vector.load %arg7[%c0_11, %c0_12] : memref<16x8xf32, #tpu.memory_space<vmem>>, vector<16x8xf32>
    %cst_13 = arith.constant -1.000000e+30 : f32
    %17 = vector.broadcast %cst_13 : f32 to vector<16x8xf32>
    %c0_i32 = arith.constant 0 : i32
    %cst_14 = arith.constant dense<0x7F800000> : vector<16xf32>
    %18 = vector.multi_reduction <minimumf>, %14, %cst_14 [1] : vector<16x16xf32> to vector<16xf32>
    %19 = vector.shape_cast %18 : vector<16xf32> to vector<16x1xf32>
    %20 = vector.broadcast %19 : vector<16x1xf32> to vector<16x16xf32>
    %21 = arith.cmpf ole, %14, %20 : vector<16x16xf32>
    %c16_i32 = arith.constant 16 : i32
    %22 = vector.broadcast %c16_i32 : i32 to vector<16x16xi32>
    %23 = arith.select %21, %15, %22 : vector<16x16xi1>, vector<16x16xi32>
    %cst_15 = arith.constant dense<2147483647> : vector<16xi32>
    %24 = vector.multi_reduction <minsi>, %23, %cst_15 [1] : vector<16x16xi32> to vector<16xi32>
    %25 = vector.shape_cast %24 : vector<16xi32> to vector<16x1xi32>
    %26 = vector.broadcast %25 : vector<16x1xi32> to vector<16x16xi32>
    %27 = arith.cmpi eq, %15, %26 : vector<16x16xi32>
    %28 = arith.extui %27 : vector<16x16xi1> to vector<16x16xi32>
    %29 = arith.sitofp %28 : vector<16x16xi32> to vector<16x16xf32>
    %cst_16 = arith.constant dense<0.000000e+00> : vector<16x8xf32>
    %30 = tpu.matmul %29, %16, %cst_16 {dimension_numbers = #tpu.dot_dimension_numbers<[1], [0], [0], [1], [0, 0, 1, 1], [], []>} : vector<16x16xf32>, vector<16x8xf32>, vector<16x8xf32> -> vector<16x8xf32>
    %31 = arith.maximumf %17, %30 : vector<16x8xf32>
    %cst_17 = arith.constant 1.000000e+30 : f32
    %32 = vector.broadcast %cst_17 : f32 to vector<16x16xf32>
    %33 = arith.select %27, %32, %14 : vector<16x16xi1>, vector<16x16xf32>
    %c1_i32 = arith.constant 1 : i32
    %cst_18 = arith.constant dense<0x7F800000> : vector<16xf32>
    %34 = vector.multi_reduction <minimumf>, %33, %cst_18 [1] : vector<16x16xf32> to vector<16xf32>
    %35 = vector.shape_cast %34 : vector<16xf32> to vector<16x1xf32>
    %36 = vector.broadcast %35 : vector<16x1xf32> to vector<16x16xf32>
    %37 = arith.cmpf ole, %33, %36 : vector<16x16xf32>
    %c16_i32_19 = arith.constant 16 : i32
    %38 = vector.broadcast %c16_i32_19 : i32 to vector<16x16xi32>
    %39 = arith.select %37, %15, %38 : vector<16x16xi1>, vector<16x16xi32>
    %cst_20 = arith.constant dense<2147483647> : vector<16xi32>
    %40 = vector.multi_reduction <minsi>, %39, %cst_20 [1] : vector<16x16xi32> to vector<16xi32>
    %41 = vector.shape_cast %40 : vector<16xi32> to vector<16x1xi32>
    %42 = vector.broadcast %41 : vector<16x1xi32> to vector<16x16xi32>
    %43 = arith.cmpi eq, %15, %42 : vector<16x16xi32>
    %44 = arith.extui %43 : vector<16x16xi1> to vector<16x16xi32>
    %45 = arith.sitofp %44 : vector<16x16xi32> to vector<16x16xf32>
    %cst_21 = arith.constant dense<0.000000e+00> : vector<16x8xf32>
    %46 = tpu.matmul %45, %16, %cst_21 {dimension_numbers = #tpu.dot_dimension_numbers<[1], [0], [0], [1], [0, 0, 1, 1], [], []>} : vector<16x16xf32>, vector<16x8xf32>, vector<16x8xf32> -> vector<16x8xf32>
    %47 = arith.maximumf %31, %46 : vector<16x8xf32>
    %cst_22 = arith.constant 1.000000e+30 : f32
    %48 = vector.broadcast %cst_22 : f32 to vector<16x16xf32>
    %49 = arith.select %43, %48, %33 : vector<16x16xi1>, vector<16x16xf32>
    %c2_i32 = arith.constant 2 : i32
    %cst_23 = arith.constant dense<0x7F800000> : vector<16xf32>
    %50 = vector.multi_reduction <minimumf>, %49, %cst_23 [1] : vector<16x16xf32> to vector<16xf32>
    %51 = vector.shape_cast %50 : vector<16xf32> to vector<16x1xf32>
    %52 = vector.broadcast %51 : vector<16x1xf32> to vector<16x16xf32>
    %53 = arith.cmpf ole, %49, %52 : vector<16x16xf32>
    %c16_i32_24 = arith.constant 16 : i32
    %54 = vector.broadcast %c16_i32_24 : i32 to vector<16x16xi32>
    %55 = arith.select %53, %15, %54 : vector<16x16xi1>, vector<16x16xi32>
    %cst_25 = arith.constant dense<2147483647> : vector<16xi32>
    %56 = vector.multi_reduction <minsi>, %55, %cst_25 [1] : vector<16x16xi32> to vector<16xi32>
    %57 = vector.shape_cast %56 : vector<16xi32> to vector<16x1xi32>
    %58 = vector.broadcast %57 : vector<16x1xi32> to vector<16x16xi32>
    %59 = arith.cmpi eq, %15, %58 : vector<16x16xi32>
    %60 = arith.extui %59 : vector<16x16xi1> to vector<16x16xi32>
    %61 = arith.sitofp %60 : vector<16x16xi32> to vector<16x16xf32>
    %cst_26 = arith.constant dense<0.000000e+00> : vector<16x8xf32>
    %62 = tpu.matmul %61, %16, %cst_26 {dimension_numbers = #tpu.dot_dimension_numbers<[1], [0], [0], [1], [0, 0, 1, 1], [], []>} : vector<16x16xf32>, vector<16x8xf32>, vector<16x8xf32> -> vector<16x8xf32>
    %63 = arith.maximumf %47, %62 : vector<16x8xf32>
    %cst_27 = arith.constant 1.000000e+30 : f32
    %64 = vector.broadcast %cst_27 : f32 to vector<16x16xf32>
    %65 = arith.select %59, %64, %49 : vector<16x16xi1>, vector<16x16xf32>
    %c3_i32 = arith.constant 3 : i32
    %cst_28 = arith.constant dense<0x7F800000> : vector<16xf32>
    %66 = vector.multi_reduction <minimumf>, %65, %cst_28 [1] : vector<16x16xf32> to vector<16xf32>
    %67 = vector.shape_cast %66 : vector<16xf32> to vector<16x1xf32>
    %68 = vector.broadcast %67 : vector<16x1xf32> to vector<16x16xf32>
    %69 = arith.cmpf ole, %65, %68 : vector<16x16xf32>
    %c16_i32_29 = arith.constant 16 : i32
    %70 = vector.broadcast %c16_i32_29 : i32 to vector<16x16xi32>
    %71 = arith.select %69, %15, %70 : vector<16x16xi1>, vector<16x16xi32>
    %cst_30 = arith.constant dense<2147483647> : vector<16xi32>
    %72 = vector.multi_reduction <minsi>, %71, %cst_30 [1] : vector<16x16xi32> to vector<16xi32>
    %73 = vector.shape_cast %72 : vector<16xi32> to vector<16x1xi32>
    %74 = vector.broadcast %73 : vector<16x1xi32> to vector<16x16xi32>
    %75 = arith.cmpi eq, %15, %74 : vector<16x16xi32>
    %76 = arith.extui %75 : vector<16x16xi1> to vector<16x16xi32>
    %77 = arith.sitofp %76 : vector<16x16xi32> to vector<16x16xf32>
    %cst_31 = arith.constant dense<0.000000e+00> : vector<16x8xf32>
    %78 = tpu.matmul %77, %16, %cst_31 {dimension_numbers = #tpu.dot_dimension_numbers<[1], [0], [0], [1], [0, 0, 1, 1], [], []>} : vector<16x16xf32>, vector<16x8xf32>, vector<16x8xf32> -> vector<16x8xf32>
    %79 = arith.maximumf %63, %78 : vector<16x8xf32>
    %cst_32 = arith.constant 1.000000e+30 : f32
    %80 = vector.broadcast %cst_32 : f32 to vector<16x16xf32>
    %81 = arith.select %75, %80, %65 : vector<16x16xi1>, vector<16x16xf32>
    %c0_33 = arith.constant 0 : index
    %c0_34 = arith.constant 0 : index
    %82 = vector.load %arg6[%c0_33, %c0_34] : memref<16x8xf32, #tpu.memory_space<vmem>>, vector<16x8xf32>
    %83 = arith.addf %82, %79 : vector<16x8xf32>
    %cst_35 = arith.constant 0.000000e+00 : f32
    %84 = vector.broadcast %cst_35 : f32 to vector<16x8xf32>
    %85 = arith.cmpf ogt, %83, %84 : vector<16x8xf32>
    %cst_36 = arith.constant 2.000000e-01 : f32
    %86 = vector.broadcast %cst_36 : f32 to vector<16x8xf32>
    %87 = arith.mulf %86, %83 : vector<16x8xf32>
    %88 = arith.select %85, %83, %87 : vector<16x8xi1>, vector<16x8xf32>
    %c0_37 = arith.constant 0 : index
    %c0_38 = arith.constant 0 : index
    %89 = vector.load %arg8[%c0_37, %c0_38] : memref<1x8xf32, #tpu.memory_space<vmem>>, vector<1x8xf32>
    %90 = vector.broadcast %89 : vector<1x8xf32> to vector<16x8xf32>
    %91 = arith.mulf %88, %90 : vector<16x8xf32>
    %c0_39 = arith.constant 0 : index
    %c0_40 = arith.constant 0 : index
    %92 = vector.load %arg9[%c0_39, %c0_40] : memref<1x8xf32, #tpu.memory_space<vmem>>, vector<1x8xf32>
    %93 = vector.broadcast %92 : vector<1x8xf32> to vector<16x8xf32>
    %94 = arith.addf %91, %93 : vector<16x8xf32>
    %cst_41 = arith.constant 0.000000e+00 : f32
    %95 = vector.broadcast %cst_41 : f32 to vector<16x8xf32>
    %96 = arith.maximumf %94, %95 : vector<16x8xf32>
    %c0_42 = arith.constant 0 : index
    %c0_43 = arith.constant 0 : index
    %97 = vector.load %arg10[%c0_42, %c0_43] : memref<16x8xf32, #tpu.memory_space<vmem>>, vector<16x8xf32>
    tpu.vector_store %arg10[%c0_42, %c0_43], %96 {strides = array<i32>} : memref<16x8xf32, #tpu.memory_space<vmem>>, vector<16x8xf32>,
    %98 = arith.mulf %96, %96 : vector<16x8xf32>
    %cst_44 = arith.constant dense<0.000000e+00> : vector<16xf32>
    %99 = vector.multi_reduction <add>, %98, %cst_44 [1] : vector<16x8xf32> to vector<16xf32>
    %100 = vector.shape_cast %99 : vector<16xf32> to vector<16x1xf32>
    %c0_45 = arith.constant 0 : index
    %c0_46 = arith.constant 0 : index
    %101 = vector.load %arg11[%c0_45, %c0_46] : memref<16x1xf32, #tpu.memory_space<vmem>>, vector<16x1xf32>
    tpu.vector_store %arg11[%c0_45, %c0_46], %100 {strides = array<i32>} : memref<16x1xf32, #tpu.memory_space<vmem>>, vector<16x1xf32>,
    return
  }
  func.func @transform_0(%arg0: i32) -> (i32, i32) {
    %c0_i32 = arith.constant 0 : i32
    %c0_i32_0 = arith.constant 0 : i32
    return %arg0, %c0_i32 : i32, i32
  }
  func.func @transform_1(%arg0: i32) -> (i32, i32) {
    %c0_i32 = arith.constant 0 : i32
    %c0_i32_0 = arith.constant 0 : i32
    %c0_i32_1 = arith.constant 0 : i32
    return %c0_i32, %c0_i32_0 : i32, i32
  }
  func.func @transform_2(%arg0: i32) -> (i32, i32) {
    %c0_i32 = arith.constant 0 : i32
    %c0_i32_0 = arith.constant 0 : i32
    %c0_i32_1 = arith.constant 0 : i32
    return %c0_i32, %c0_i32_0 : i32, i32
  }
  func.func @transform_3(%arg0: i32) -> (i32, i32) {
    %c0_i32 = arith.constant 0 : i32
    %c0_i32_0 = arith.constant 0 : i32
    return %arg0, %c0_i32 : i32, i32
  }
  func.func @transform_4(%arg0: i32) -> (i32, i32) {
    %c0_i32 = arith.constant 0 : i32
    %c0_i32_0 = arith.constant 0 : i32
    %c0_i32_1 = arith.constant 0 : i32
    return %c0_i32, %c0_i32_0 : i32, i32
  }
  func.func @transform_5(%arg0: i32) -> (i32, i32) {
    %c0_i32 = arith.constant 0 : i32
    %c0_i32_0 = arith.constant 0 : i32
    return %arg0, %c0_i32 : i32, i32
  }
  func.func @transform_6(%arg0: i32) -> (i32, i32) {
    %c0_i32 = arith.constant 0 : i32
    %c0_i32_0 = arith.constant 0 : i32
    %c0_i32_1 = arith.constant 0 : i32
    return %c0_i32, %c0_i32_0 : i32, i32
  }
  func.func @transform_7(%arg0: i32) -> (i32, i32) {
    %c0_i32 = arith.constant 0 : i32
    %c0_i32_0 = arith.constant 0 : i32
    %c0_i32_1 = arith.constant 0 : i32
    return %c0_i32, %c0_i32_0 : i32, i32
  }
  func.func @transform_8(%arg0: i32) -> (i32, i32) {
    %c0_i32 = arith.constant 0 : i32
    %c0_i32_0 = arith.constant 0 : i32
    %c0_i32_1 = arith.constant 0 : i32
    return %c0_i32, %c0_i32_0 : i32, i32
  }
  func.func @transform_9(%arg0: i32) -> (i32, i32) {
    %c0_i32 = arith.constant 0 : i32
    %c0_i32_0 = arith.constant 0 : i32
    return %arg0, %c0_i32 : i32, i32
  }
  func.func @transform_10(%arg0: i32) -> (i32, i32) {
    %c0_i32 = arith.constant 0 : i32
    %c0_i32_0 = arith.constant 0 : i32
    return %arg0, %c0_i32 : i32, i32
  }
}

</mosaic_0001>

<bundles_post_ra>
// kernel: tpu_custom_call.1
= control target key start
LH: loop header
LB: loop body
LE: loop exit
PB: predicated region body
PF: predicated region fallthrough
CT: control target
= control target key end

     0   :  { %vm44_vm0 = vcmask 1043456   ;;  %vm37_vm1 = vcmask 31744   ;;  %v808_v3 = vmov 0   ;;  %vm155_vm4 = vcmask 130048   ;;  %s991_s1 = inlined_call_operand.vmem [shape: f32[4,16], index: 1, kind: input, shape index: {}]   ;;  %s992_s0 = inlined_call_operand.vmem [shape: f32[16,4], index: 0, kind: input, shape index: {}]   ;;  %s993_s3 = inlined_call_operand.vmem [shape: s32[16,1], index: 3, kind: input, shape index: {}]   ;;  %s994_s2 = inlined_call_operand.vmem [shape: f32[1,16], index: 2, kind: input, shape index: {}]   ;;  %s995_s4 = inlined_call_operand.vmem [shape: s32[1,16], index: 4, kind: input, shape index: {}]   ;;  %s996_s6 = inlined_call_operand.vmem [shape: f32[16,8], index: 6, kind: input, shape index: {}]   ;;  %s997_s5 = inlined_call_operand.vmem [shape: f32[16,8], index: 5, kind: input, shape index: {}]   ;;  %s998_s7 = inlined_call_operand.vmem [shape: f32[1,8], index: 7, kind: input, shape index: {}]   ;;  %s999_s8 = inlined_call_operand.vmem [shape: f32[1,8], index: 8, kind: input, shape index: {}]   ;;  %s1000_s9 = inlined_call_operand.vmem [shape: f32[16,8], index: 9, kind: output, shape index: {0}]   ;;  %s1001_s10 = inlined_call_operand.vmem [shape: f32[16,1], index: 10, kind: output, shape index: {1}]  }
   0x1   :  { %v36_v0 = vld [vmem:[%s991_s1] sm:$0xf]  ;;  %v35_v2 = vld [vmem:[%s992_s0 + $0x8] sm:$0xff]  ;;  %807 = vset.pattern.permute.xlu0 %v808_v3  ;;  %v151_v20 = vlaneseq  ;;  %v809_v51 = vmov 0.0  }
   0x2   :  { %v34_v1 = vld [vmem:[%s992_s0] sm:$0xff]  ;;  %772 = vmatprep.subr.msk.mxu0 %vm44_vm0, %v36_v0  ;;  %v135_v5 = vld [vmem:[%s993_s3 + $0x8] sm:$0xff] }
   0x3   :  { %774 = vmatprep.mubr.msk.f32.mxu0 %vm37_vm1, %v34_v1  ;;  %v134_v4 = vld [vmem:[%s993_s3] sm:$0xff]  ;;  %773 = vmatpush3.msk.msra.mxu0 %vm44_vm0, %v36_v0  ;;  %v891_v21 = vand.u32 127, %v151_v20  ;;  %v901_v40 = vld [vmem:[%s996_s6 + $0x8] sm:$0xff] }
   0x4   :  { %138 = vperm.xlu0 %807, %v134_v4   ;;  %775 = vmatmul.mubr.msk.f32.vlgmr.msra.gmra.mxu0 %vm37_vm1, %v35_v2  ;;  %v733_v9 = vld [vmem:[%s994_s2] ss:$0 sm:$0xff] }
   0x5   :  { %v734_v11 = vld [vmem:[%s995_s4] ss:$0 sm:$0xff]  ;;  %777 = vmatprep.subr.mxu1 %v901_v40  ;;  %784 = vmatprep.subr.mxu0 %v901_v40 }
   0x6   :  { %778 = vmatpush3.msra.mxu1 %v901_v40  ;;  %v909_v41 = vld [vmem:[%s996_s6] sm:$0xff]  ;;  %785 = vmatpush3.msra.mxu0 %v901_v40 }
   0x7   :  { %779 = vmatprep.subr.mxu1 %v909_v41  ;;  %786 = vmatprep.subr.mxu0 %v909_v41 }
   0x8   :  { %141 = vperm.xlu0 %807, %v135_v5   ;;  %780 = vmatpush3.msra.mxu1 %v909_v41 }
   0x9   :  { %787 = vmatpush3.msra.mxu0 %v909_v41  ;;  %791 = vmatprep.subr.mxu1 %v901_v40 }
   0xa   :  { %798 = vmatprep.subr.mxu0 %v901_v40 }
  0x7f   :  { %v139_v6 = vpop.permute.xlu0 %138 }
  0x80   :  { %vm147_vm2 = vcmp.eq.s32.totalorder %v139_v6, %v734_v11 }
  0x83   :  { %v142_v13 = vpop.permute.xlu0 %141 }
  0x84   :  { %vm148_vm3 = vcmp.eq.s32.totalorder %v142_v13, %v734_v11 }
  0xc4   :  { %v776_v7 = vpop.f32.mrf.mxu0 }
  0xc5   :  { %v125_v8 = vmul.f32 2.0, %v776_v7 }
  0xc6   :  { %v114_v10 = vpop.f32.mrf.mxu0 }
  0xc7   :  { %v124_v12 = vmul.f32 2.0, %v114_v10  ;;  %v133_v14 = vsub.f32 %v733_v9, %v125_v8 }
  0xc9   :  { %v132_v15 = vsub.f32 %v733_v9, %v124_v12  ;;  %v887_v18 = vsel %vm148_vm3, %v133_v14, 1e+30 }
  0xca   :  { %v159_v19 = vsel %vm155_vm4, %v887_v18, inf }
  0xcb   :  { %v149_v16 = vsel %vm147_vm2, %v132_v15, 1e+30 }
  0xcc   :  { %v156_v17 = vsel %vm155_vm4, %v149_v16, inf }
  0xcd   :  { %157 = vmin.xlane.f32.xlu1 %v156_v17 }
  0xd1   :  { %160 = vmin.xlane.f32.xlu1 %v159_v19 }
 0x156   :  { %v158_v22 = vpop.xlane.xlu1 %157 }
 0x157   :  { %vm162_vm5 = vcmp.le.f32.partialorder %v149_v16, %v158_v22 }
 0x158   :  { %v164_v23 = vsel %vm162_vm5, %v891_v21, 16 }
 0x159   :  { %v166_v24 = vsel %vm155_vm4, %v164_v23, 2147483647 }
 0x15a   :  { %v161_v25 = vpop.xlane.xlu1 %160  ;;  %v168_v26 = vshra.s32 %v166_v24, 16  ;;  %v167_v32 = vand.u32 65535, %v166_v24 }
 0x15b   :  { %vm163_vm6 = vcmp.le.f32.partialorder %v887_v18, %v161_v25 }
 0x15c   :  { %v165_v27 = vsel %vm163_vm6, %v891_v21, 16  ;;  %v170_v28 = vcvt.s32.f32 %v168_v26  ;;  %v169_v34 = vcvt.s32.f32 %v167_v32 }
 0x15d   :  { %v181_v29 = vsel %vm155_vm4, %v165_v27, 2147483647 }
 0x15e   :  { %171 = vmin.xlane.f32.xlu0 %v170_v28  ;;  %v183_v30 = vshra.s32 %v181_v29, 16  ;;  %v182_v35 = vand.u32 65535, %v181_v29 }
 0x160   :  { %v185_v31 = vcvt.s32.f32 %v183_v30  ;;  %v184_v38 = vcvt.s32.f32 %v182_v35 }
 0x162   :  { %186 = vmin.xlane.f32.xlu1 %v185_v31 }
 0x1e7   :  { %v172_v33 = vpop.xlane.xlu0 %171 }
 0x1e8   :  { %vm173_vm7 = vcmp.eq.f32.partialorder %v170_v28, %v172_v33  ;;  %v178_v42 = vcvt.f32.s32 %v172_v33 }
 0x1e9   :  { %v174_v36 = vsel %vm173_vm7, %v169_v34, inf }
 0x1ea   :  { %175 = vmin.xlane.f32.xlu1 %v174_v36  ;;  %v179_v44 = vshll.u32 %v178_v42, 16 }
 0x1eb   :  { %v187_v37 = vpop.xlane.xlu1 %186 }
 0x1ec   :  { %vm188_vm8 = vcmp.eq.f32.partialorder %v185_v31, %v187_v37  ;;  %v193_v45 = vcvt.f32.s32 %v187_v37 }
 0x1ed   :  { %v189_v39 = vsel %vm188_vm8, %v184_v38, inf }
 0x1ee   :  { %190 = vmin.xlane.f32.xlu1 %v189_v39  ;;  %v194_v49 = vshll.u32 %v193_v45, 16 }
 0x273   :  { %v176_v43 = vpop.xlane.xlu1 %175 }
 0x274   :  { %v177_v46 = vcvt.f32.s32 %v176_v43 }
 0x276   :  { %v180_v47 = vadd.s32 %v179_v44, %v177_v46 }
 0x277   :  { %v191_v48 = vpop.xlane.xlu1 %190 }
 0x278   :  { %v192_v50 = vcvt.f32.s32 %v191_v48  ;;  %vm196_vm9 = vcmp.eq.s32.totalorder %v891_v21, %v180_v47 }
 0x279   :  { %v735_v52 = vsel %vm196_vm9, 1.0, %v809_v51  ;;  %v285_v53 = vsel %vm196_vm9, 1e+30, %v149_v16 }
 0x27a   :  { %v195_v54 = vadd.s32 %v194_v49, %v192_v50  ;;  %781 = vmatprep.mubr.msk.f32.mxu1 %vm155_vm4, %v735_v52  ;;  %v287_v55 = vsel %vm155_vm4, %v285_v53, inf }
 0x27b   :  { %288 = vmin.xlane.f32.xlu1 %v287_v55 }
 0x27c   :  { %vm197_vm10 = vcmp.eq.s32.totalorder %v891_v21, %v195_v54 }
 0x27d   :  { %v736_v56 = vsel %vm197_vm10, 1.0, %v809_v51  ;;  %v286_v57 = vsel %vm197_vm10, 1e+30, %v887_v18 }
 0x27e   :  { %782 = vmatmul.mubr.msk.f32.vlgmr.msra.gmra.mxu1 %vm155_vm4, %v736_v56  ;;  %v290_v58 = vsel %vm155_vm4, %v286_v57, inf }
 0x27f   :  { %291 = vmin.xlane.f32.xlu1 %v290_v58  ;;  %792 = vmatpush3.msra.mxu1 %v901_v40 }
 0x280   :  { %793 = vmatprep.subr.mxu1 %v909_v41 }
 0x281   :  { %794 = vmatpush3.msra.mxu1 %v909_v41 }
 0x304   :  { %v289_v59 = vpop.xlane.xlu1 %288 }
 0x305   :  { %vm293_vm11 = vcmp.le.f32.partialorder %v285_v53, %v289_v59 }
 0x306   :  { %v295_v60 = vsel %vm293_vm11, %v891_v21, 16 }
 0x307   :  { %v297_v61 = vsel %vm155_vm4, %v295_v60, 2147483647 }
 0x308   :  { %v292_v62 = vpop.xlane.xlu1 %291  ;;  %v299_v63 = vshra.s32 %v297_v61, 16  ;;  %v298_v5 = vand.u32 65535, %v297_v61 }
 0x309   :  { %vm294_vm12 = vcmp.le.f32.partialorder %v286_v57, %v292_v62 }
 0x30a   :  { %v296_v0 = vsel %vm294_vm12, %v891_v21, 16  ;;  %v301_v1 = vcvt.s32.f32 %v299_v63  ;;  %v300_v7 = vcvt.s32.f32 %v298_v5 }
 0x30b   :  { %v312_v2 = vsel %vm155_vm4, %v296_v0, 2147483647 }
 0x30c   :  { %302 = vmin.xlane.f32.xlu1 %v301_v1  ;;  %v314_v3 = vshra.s32 %v312_v2, 16  ;;  %v313_v8 = vand.u32 65535, %v312_v2 }
 0x30e   :  { %v316_v4 = vcvt.s32.f32 %v314_v3  ;;  %v315_v11 = vcvt.s32.f32 %v313_v8 }
 0x310   :  { %317 = vmin.xlane.f32.xlu1 %v316_v4 }
 0x395   :  { %v303_v6 = vpop.xlane.xlu1 %302 }
 0x396   :  { %vm304_vm13 = vcmp.eq.f32.partialorder %v301_v1, %v303_v6  ;;  %v309_v13 = vcvt.f32.s32 %v303_v6 }
 0x397   :  { %v305_v9 = vsel %vm304_vm13, %v300_v7, inf }
 0x398   :  { %306 = vmin.xlane.f32.xlu1 %v305_v9  ;;  %v310_v15 = vshll.u32 %v309_v13, 16 }
 0x399   :  { %v318_v10 = vpop.xlane.xlu1 %317 }
 0x39a   :  { %vm319_vm14 = vcmp.eq.f32.partialorder %v316_v4, %v318_v10  ;;  %v324_v16 = vcvt.f32.s32 %v318_v10 }
 0x39b   :  { %v320_v12 = vsel %vm319_vm14, %v315_v11, inf }
 0x39c   :  { %321 = vmin.xlane.f32.xlu0 %v320_v12  ;;  %v325_v20 = vshll.u32 %v324_v16, 16 }
 0x421   :  { %v307_v14 = vpop.xlane.xlu1 %306 }
 0x422   :  { %v308_v17 = vcvt.f32.s32 %v307_v14 }
 0x424   :  { %v311_v18 = vadd.s32 %v310_v15, %v308_v17 }
 0x425   :  { %v322_v19 = vpop.xlane.xlu0 %321 }
 0x426   :  { %v323_v22 = vcvt.f32.s32 %v322_v19  ;;  %vm327_vm15 = vcmp.eq.s32.totalorder %v891_v21, %v311_v18 }
 0x427   :  { %v739_v23 = vsel %vm327_vm15, 1.0, %v809_v51  ;;  %v416_v24 = vsel %vm327_vm15, 1e+30, %v285_v53  ;;  %vm708_vm15 = vcmask 64512  }
 0x428   :  { %v326_v25 = vadd.s32 %v325_v20, %v323_v22  ;;  %788 = vmatprep.mubr.msk.f32.mxu0 %vm155_vm4, %v739_v23  ;;  %v418_v26 = vsel %vm155_vm4, %v416_v24, inf }
 0x429   :  { %419 = vmin.xlane.f32.xlu1 %v418_v26 }
 0x42a   :  { %vm328_vm0 = vcmp.eq.s32.totalorder %v891_v21, %v326_v25 }
 0x42b   :  { %v740_v27 = vsel %vm328_vm0, 1.0, %v809_v51  ;;  %v417_v28 = vsel %vm328_vm0, 1e+30, %v286_v57  ;;  %vm719_vm0 = vcmask 7168  }
 0x42c   :  { %789 = vmatmul.mubr.msk.f32.vlgmr.msra.gmra.mxu0 %vm155_vm4, %v740_v27  ;;  %v421_v29 = vsel %vm155_vm4, %v417_v28, inf }
 0x42d   :  { %422 = vmin.xlane.f32.xlu0 %v421_v29  ;;  %799 = vmatpush3.msra.mxu0 %v901_v40 }
 0x42e   :  { %800 = vmatprep.subr.mxu0 %v909_v41 }
 0x42f   :  { %801 = vmatpush3.msra.mxu0 %v909_v41 }
 0x4b2   :  { %v420_v30 = vpop.xlane.xlu1 %419 }
 0x4b3   :  { %vm424_vm1 = vcmp.le.f32.partialorder %v416_v24, %v420_v30 }
 0x4b4   :  { %v426_v31 = vsel %vm424_vm1, %v891_v21, 16 }
 0x4b5   :  { %v428_v32 = vsel %vm155_vm4, %v426_v31, 2147483647 }
 0x4b6   :  { %v423_v33 = vpop.xlane.xlu0 %422  ;;  %v430_v34 = vshra.s32 %v428_v32, 16  ;;  %v429_v40 = vand.u32 65535, %v428_v32  ;;  %v783_v32 = vpop.f32.mrf.mxu1 }
 0x4b7   :  { %vm425_vm2 = vcmp.le.f32.partialorder %v417_v28, %v423_v33 }
 0x4b8   :  { %v427_v35 = vsel %vm425_vm2, %v891_v21, 16  ;;  %v432_v36 = vcvt.s32.f32 %v430_v34  ;;  %v431_v42 = vcvt.s32.f32 %v429_v40  ;;  %v274_v33 = vpop.f32.mrf.mxu1 }
 0x4b9   :  { %v443_v37 = vsel %vm155_vm4, %v427_v35, 2147483647 }
 0x4ba   :  { %433 = vmin.xlane.f32.xlu1 %v432_v36  ;;  %v445_v38 = vshra.s32 %v443_v37, 16  ;;  %v444_v43 = vand.u32 65535, %v443_v37 }
 0x4bc   :  { %v447_v39 = vcvt.s32.f32 %v445_v38  ;;  %v446_v46 = vcvt.s32.f32 %v444_v43  ;;  %v283_v38 = vmax.f32 %v274_v33, -1e+30 }
 0x4be   :  { %448 = vmin.xlane.f32.xlu0 %v447_v39 }
 0x4ec   :  { %v790_v34 = vpop.f32.mrf.mxu0 }
 0x4ee   :  { %v405_v37 = vpop.f32.mrf.mxu0 }
 0x543   :  { %v434_v41 = vpop.xlane.xlu1 %433 }
 0x544   :  { %vm435_vm3 = vcmp.eq.f32.partialorder %v432_v36, %v434_v41  ;;  %v440_v48 = vcvt.f32.s32 %v434_v41  ;;  %v284_v36 = vmax.f32 %v783_v32, -1e+30  ;;  %v414_v41 = vmax.f32 %v283_v38, %v405_v37 }
 0x545   :  { %v436_v44 = vsel %vm435_vm3, %v431_v42, inf }
 0x546   :  { %437 = vmin.xlane.f32.xlu1 %v436_v44  ;;  %v441_v50 = vshll.u32 %v440_v48, 16 }
 0x547   :  { %v449_v45 = vpop.xlane.xlu0 %448 }
 0x548   :  { %vm450_vm5 = vcmp.eq.f32.partialorder %v447_v39, %v449_v45  ;;  %v455_v52 = vcvt.f32.s32 %v449_v45  ;;  %v415_v39 = vmax.f32 %v284_v36, %v790_v34 }
 0x549   :  { %v451_v47 = vsel %vm450_vm5, %v446_v46, inf  ;;  %v678_v46 = vld [vmem:[%s997_s5] sm:$0xff] }
 0x54a   :  { %452 = vmin.xlane.f32.xlu0 %v451_v47  ;;  %v456_v56 = vshll.u32 %v455_v52, 16  ;;  %v751_v52 = vld [vmem:[%s998_s7] ss:$0 sm:$0xff] }
 0x5cf   :  { %v438_v49 = vpop.xlane.xlu1 %437 }
 0x5d0   :  { %v439_v53 = vcvt.f32.s32 %v438_v49 }
 0x5d2   :  { %v442_v54 = vadd.s32 %v441_v50, %v439_v53 }
 0x5d3   :  { %v453_v55 = vpop.xlane.xlu0 %452 }
 0x5d4   :  { %v454_v57 = vcvt.f32.s32 %v453_v55  ;;  %vm458_vm6 = vcmp.eq.s32.totalorder %v891_v21, %v442_v54  ;;  %v752_v55 = vld [vmem:[%s999_s8] ss:$0 sm:$0xff] }
 0x5d5   :  { %v743_v58 = vsel %vm458_vm6, 1.0, %v809_v51  ;;  %v547_v59 = vsel %vm458_vm6, 1e+30, %v416_v24 }
 0x5d6   :  { %v457_v60 = vadd.s32 %v456_v56, %v454_v57  ;;  %795 = vmatprep.mubr.msk.f32.mxu1 %vm155_vm4, %v743_v58  ;;  %v549_v61 = vsel %vm155_vm4, %v547_v59, inf }
 0x5d7   :  { %550 = vmin.xlane.f32.xlu1 %v549_v61 }
 0x5d8   :  { %vm459_vm7 = vcmp.eq.s32.totalorder %v891_v21, %v457_v60 }
 0x5d9   :  { %v744_v62 = vsel %vm459_vm7, 1.0, %v809_v51  ;;  %v548_v63 = vsel %vm459_vm7, 1e+30, %v417_v28 }
 0x5da   :  { %796 = vmatmul.mubr.msk.f32.vlgmr.msra.gmra.mxu1 %vm155_vm4, %v744_v62  ;;  %v552_v0 = vsel %vm155_vm4, %v548_v63, inf }
 0x5db   :  { %553 = vmin.xlane.f32.xlu0 %v552_v0 }
 0x660   :  { %v551_v1 = vpop.xlane.xlu1 %550 }
 0x661   :  { %vm555_vm8 = vcmp.le.f32.partialorder %v547_v59, %v551_v1 }
 0x662   :  { %v557_v2 = vsel %vm555_vm8, %v891_v21, 16 }
 0x663   :  { %v559_v3 = vsel %vm155_vm4, %v557_v2, 2147483647 }
 0x664   :  { %v554_v4 = vpop.xlane.xlu0 %553  ;;  %v561_v5 = vshra.s32 %v559_v3, 16  ;;  %v560_v11 = vand.u32 65535, %v559_v3 }
 0x665   :  { %vm556_vm9 = vcmp.le.f32.partialorder %v548_v63, %v554_v4 }
 0x666   :  { %v558_v6 = vsel %vm556_vm9, %v891_v21, 16  ;;  %v563_v7 = vcvt.s32.f32 %v561_v5  ;;  %v562_v13 = vcvt.s32.f32 %v560_v11 }
 0x667   :  { %v574_v8 = vsel %vm155_vm4, %v558_v6, 2147483647 }
 0x668   :  { %564 = vmin.xlane.f32.xlu1 %v563_v7  ;;  %v576_v9 = vshra.s32 %v574_v8, 16  ;;  %v575_v14 = vand.u32 65535, %v574_v8 }
 0x66a   :  { %v578_v10 = vcvt.s32.f32 %v576_v9  ;;  %v577_v17 = vcvt.s32.f32 %v575_v14 }
 0x66c   :  { %579 = vmin.xlane.f32.xlu0 %v578_v10 }
 0x69a   :  { %v797_v35 = vpop.f32.mrf.mxu1 }
 0x69b   :  { %v546_v42 = vmax.f32 %v415_v39, %v797_v35 }
 0x69c   :  { %v536_v40 = vpop.f32.mrf.mxu1 }
 0x69d   :  { %v545_v44 = vmax.f32 %v414_v41, %v536_v40 }
 0x6f1   :  { %v565_v12 = vpop.xlane.xlu1 %564 }
 0x6f2   :  { %vm566_vm10 = vcmp.eq.f32.partialorder %v563_v7, %v565_v12  ;;  %v571_v19 = vcvt.f32.s32 %v565_v12 }
 0x6f3   :  { %v567_v15 = vsel %vm566_vm10, %v562_v13, inf }
 0x6f4   :  { %568 = vmin.xlane.f32.xlu1 %v567_v15  ;;  %v572_v22 = vshll.u32 %v571_v19, 16 }
 0x6f5   :  { %v580_v16 = vpop.xlane.xlu0 %579 }
 0x6f6   :  { %vm581_vm11 = vcmp.eq.f32.partialorder %v578_v10, %v580_v16  ;;  %v586_v23 = vcvt.f32.s32 %v580_v16 }
 0x6f7   :  { %v582_v18 = vsel %vm581_vm11, %v577_v17, inf }
 0x6f8   :  { %583 = vmin.xlane.f32.xlu0 %v582_v18  ;;  %v587_v27 = vshll.u32 %v586_v23, 16 }
 0x77d   :  { %v569_v20 = vpop.xlane.xlu1 %568 }
 0x77e   :  { %v570_v24 = vcvt.f32.s32 %v569_v20 }
 0x780   :  { %v573_v25 = vadd.s32 %v572_v22, %v570_v24 }
 0x781   :  { %v584_v26 = vpop.xlane.xlu0 %583 }
 0x782   :  { %v585_v28 = vcvt.f32.s32 %v584_v26  ;;  %vm589_vm12 = vcmp.eq.s32.totalorder %v891_v21, %v573_v25 }
 0x783   :  { %v747_v29 = vsel %vm589_vm12, 1.0, %v809_v51 }
 0x784   :  { %v588_v30 = vadd.s32 %v587_v27, %v585_v28  ;;  %802 = vmatprep.mubr.msk.f32.mxu0 %vm155_vm4, %v747_v29 }
 0x786   :  { %vm590_vm13 = vcmp.eq.s32.totalorder %v891_v21, %v588_v30  ;;  %v679_v21 = vld [vmem:[%s997_s5 + $0x8] sm:$0xff] }
 0x787   :  { %v748_v31 = vsel %vm590_vm13, 1.0, %v809_v51 }
 0x788   :  { %803 = vmatmul.mubr.msk.f32.vlgmr.msra.gmra.mxu0 %vm155_vm4, %v748_v31 }
 0x848   :  { %v804_v43 = vpop.f32.mrf.mxu0 }
 0x849   :  { %v677_v51 = vmax.f32 %v546_v42, %v804_v43 }
 0x84a   :  { %v667_v45 = vpop.f32.mrf.mxu0 }
 0x84b   :  { %v681_v47 = vadd.f32 %v679_v21, %v677_v51  ;;  %v676_v48 = vmax.f32 %v545_v44, %v667_v45 }
 0x84d   :  { %vm683_vm4 = vcmp.gt.f32.partialorder %v681_v47, 0.0  ;;  %v685_v49 = vmul.f32 0.2, %v681_v47  ;;  %v680_v50 = vadd.f32 %v678_v46, %v676_v48 }
 0x84f   :  { %v687_v53 = vsel %vm683_vm4, %v681_v47, %v685_v49  ;;  %vm682_vm14 = vcmp.gt.f32.partialorder %v680_v50, 0.0  ;;  %v684_v54 = vmul.f32 0.2, %v680_v50 }
 0x850   :  { %v696_v56 = vmul.f32 %v751_v52, %v687_v53 }
 0x851   :  { %v686_v57 = vsel %vm682_vm14, %v680_v50, %v684_v54 }
 0x852   :  { %v705_v58 = vadd.f32 %v752_v55, %v696_v56  ;;  %v695_v59 = vmul.f32 %v751_v52, %v686_v57 }
 0x854   :  { %v707_v60 = vmax.f32 %v705_v58, 0.0  ;;  %v704_v61 = vadd.f32 %v752_v55, %v695_v59 }
 0x856   :  { %v712_v62 = vmul.f32 %v707_v60, %v707_v60  ;;  %710 = vst.msk [vmem:[%s1000_s9 + $0x8] sm:$0xff] %vm708_vm15, %v707_v60  ;;  %v706_v63 = vmax.f32 %v704_v61, 0.0 }
 0x858   :  { %v716_v0 = vsel %vm708_vm15, %v712_v62, 0.0  ;;  %v711_v1 = vmul.f32 %v706_v63, %v706_v63  ;;  %709 = vst.msk [vmem:[%s1000_s9] sm:$0xff] %vm708_vm15, %v706_v63 }
 0x859   :  { %717 = vadd.xlane.f32.xlu0 %v716_v0 }
 0x85a   :  { %v713_v2 = vsel %vm708_vm15, %v711_v1, 0.0 }
 0x85b   :  { %714 = vadd.xlane.f32.xlu1 %v713_v2 }
 0x8e2   :  { %v718_v3 = vpop.xlane.xlu0 %717 }
 0x8e3   :  { %721 = vst.msk [vmem:[%s1001_s10 + $0x8] sm:$0xff] %vm719_vm0, %v718_v3 }
 0x8e4   :  { %v715_v4 = vpop.xlane.xlu1 %714 }
 0x8e5   :  { %720 = vst.msk [vmem:[%s1001_s10] sm:$0xff] %vm719_vm0, %v715_v4 }

</bundles_post_ra>
